<compile_context>
chip_gen: v7x
topology: tpu7x:2x2x1
jax: 0.10.0
libtpu: 0.0.40
codegen_flags: <defaults>
</compile_context>

<pallas_src>
import functools

import jax
import jax.numpy as jnp
import numpy as np
from jax.experimental import pallas as pl
from jax.experimental.pallas import tpu as pltpu

BR_CH = 8                  # hidden_state
OUT_CH = 3 * BR_CH         # fusion_conv output channels (24)
DILATIONS = (1, 2, 4)
PAD = max(DILATIONS)       # spatial halo (4) = max dilation of the 3x3 taps

_ROLL_SIGN = None


def _roll_sign():
    """Probe pltpu.roll's rotation convention once on the actual backend.

    Returns s such that pltpu.roll(x, (s * off) % n, axis)[p] == x[(p + off) % n].
    (Expected s == -1, i.e. np.roll semantics; the probe keeps the kernel
    robust either way and is only run once per process.)
    """
    global _ROLL_SIGN
    if _ROLL_SIGN is None:
        def probe(x_ref, o_ref):
            o_ref[...] = pltpu.roll(x_ref[...], shift=1, axis=1)

        x = jnp.broadcast_to(jnp.arange(128, dtype=jnp.float32), (8, 128))
        y = pl.pallas_call(
            probe, out_shape=jax.ShapeDtypeStruct((8, 128), jnp.float32))(x)
        _ROLL_SIGN = -1 if int(y[0, 0]) == 127 else 1
    return _ROLL_SIGN


def _vmem_limit_bytes():
    """Per-chip scoped-VMEM request with headroom (v7x: 64 MiB physical)."""
    try:
        cap = int(pltpu.get_tpu_info().vmem_capacity_bytes)
    except Exception:
        cap = 64 * 1024 * 1024            # conservative (v7x-sized) fallback
    return max(32 * 1024 * 1024, min(96 * 1024 * 1024, (cap * 3) // 4))


def _pick_tile_rows(H, Wp, vmem_limit):
    """Interior rows per tile so the per-step working set fits comfortably."""
    per_row = 400 * Wp                    # ~400 f32 bytes per padded pixel
    th = int(((vmem_limit * 3) // 5) // per_row) - 2 * PAD
    if th >= H:
        return H
    return max(8, (th // 8) * 8)


def fim_kernel(x_ref, valid_ref, wf_ref, bf_ref, wc_ref, wt_ref,
               ba1_ref, wa2_ref, ba2_ref, out_ref, *, Wp, roll_sign):
    P = x_ref.shape[-1]                   # padded tile pixels (multiple of 128)

    # ---- fusion_conv: 1x1 conv + ReLU; zero the halo so the dilated taps
    # see the depthwise convs' 'same' zero padding. -------------------------
    x = x_ref[0]                                               # (Cin, P)
    fused = jnp.dot(wf_ref[...], x, preferred_element_type=jnp.float32)
    fused = jnp.maximum(fused + bf_ref[...], 0.0) * valid_ref[0]   # (24, P)

    # ---- SpatialModule (3 dilated depthwise 3x3) + ChannelShuffle + first
    # att 1x1 conv, all folded into per-tap MXU matmuls.  The three center
    # taps collapse into one [8,24] matmul; the remaining 24 taps are a lane
    # roll (XLU) followed by an [8,8]@[8,P] matmul (MXU). ------------------
    a1 = jnp.dot(wc_ref[...], fused, preferred_element_type=jnp.float32)  # (8,P)
    ti = 0
    for bi, d in enumerate(DILATIONS):
        xb = fused[bi * BR_CH:(bi + 1) * BR_CH, :]             # (8, P)
        for ky in range(3):
            for kx in range(3):
                if ky == 1 and kx == 1:
                    continue
                off = (ky - 1) * d * Wp + (kx - 1) * d
                tap = pltpu.roll(xb, shift=(roll_sign * off) % P, axis=1)
                a1 = a1 + jnp.dot(wt_ref[ti], tap,
                                  preferred_element_type=jnp.float32)
                ti += 1

    # ---- att tail: ReLU -> 1x1 conv (8 -> 1, on the MXU) -> Sigmoid -------
    a1 = jnp.maximum(a1 + ba1_ref[...], 0.0)                   # (8, P)
    logit = jnp.dot(wa2_ref[...], a1,
                    preferred_element_type=jnp.float32) + ba2_ref[...]  # (1,P)
    out_ref[0] = jax.nn.sigmoid(logit)   # halo rows are sliced off outside


def fim_forward(sr, seg, params, tile_rows=None):
    """sr, seg: NCHW float32 feature maps. Returns attention map (N, 1, H, W)."""
    N, c_sr, H, W = sr.shape
    c_seg = seg.shape[1]
    Cin = c_sr + c_seg
    Wp = W + 2 * PAD

    vmem_limit = _vmem_limit_bytes()
    TH = tile_rows if tile_rows is not None else _pick_tile_rows(H, Wp, vmem_limit)
    TH = max(1, min(TH, H))
    nT = -(-H // TH)                       # tiles per image
    H_tiles = nT * TH
    THp = TH + 2 * PAD                     # tile rows incl. halo
    P = THp * Wp
    Pp = ((P + 127) // 128) * 128          # lane-dense flattened tile length

    # ---- host-side weight folding -----------------------------------------
    wf_k = jnp.transpose(params["wf"])                         # (24, Cin)
    bf_col = params["bf"].reshape(OUT_CH, 1)

    # ChannelShuffle(3) folded into att1: shuffled[s] = cat[(s%3)*8 + s//3],
    # so the effective weight on cat channel c is wa1[3*(c%8) + c//8].
    perm = np.array([3 * (c % BR_CH) + c // BR_CH for c in range(OUT_CH)])
    wa1k = jnp.transpose(params["wa1"][perm, :])               # (8, 24)

    wb = params["wb"]                                          # (3, 8, 3, 3)
    bb = params["bb"]                                          # (3, 8)

    # Per-tap att1 weights: wt[t][o, c] = wa1k[o, bi*8+c] * wb[bi, c, ky, kx].
    center_scale = jnp.concatenate([wb[bi, :, 1, 1] for bi in range(3)])
    wc = wa1k * center_scale[None, :]                          # (8, 24)
    wts = []
    for bi in range(3):
        blk = wa1k[:, bi * BR_CH:(bi + 1) * BR_CH]             # (8, 8)
        for ky in range(3):
            for kx in range(3):
                if ky == 1 and kx == 1:
                    continue
                wts.append(blk * wb[bi, :, ky, kx][None, :])
    wt = jnp.stack(wts, axis=0)                                # (24, 8, 8)

    # Depthwise biases folded through att1 into its bias.
    bb_cat = jnp.concatenate([bb[bi] for bi in range(3)])      # (24,)
    ba1_col = (params["ba1"] + wa1k @ bb_cat).reshape(BR_CH, 1)
    wa2_row = jnp.transpose(params["wa2"])                     # (1, 8)
    ba2 = params["ba2"].reshape(1, 1)

    # ---- input: concat, pad with explicit zero halo, cut halo'd row tiles --
    x = jnp.concatenate([sr, seg], axis=1)                     # (N, Cin, H, W)
    xp = jnp.pad(x, ((0, 0), (0, 0),
                     (PAD, PAD + (H_tiles - H)), (PAD, PAD)))  # rows/cols halo
    xt = jnp.stack([xp[:, :, t * TH:t * TH + THp, :] for t in range(nT)],
                   axis=1)                                     # (N,nT,Cin,THp,Wp)
    xt = xt.reshape(N * nT, Cin, P)
    if Pp != P:
        xt = jnp.pad(xt, ((0, 0), (0, 0), (0, Pp - P)))

    # {0,1} plane marking pixels inside the original HxW image (per tile).
    vmask = np.zeros((nT, THp, Wp), np.float32)
    for t in range(nT):
        for r in range(THp):
            g = t * TH + r - PAD
            if 0 <= g < H:
                vmask[t, r, PAD:PAD + W] = 1.0
    vmask = np.pad(vmask.reshape(nT, 1, P), ((0, 0), (0, 0), (0, Pp - P)))
    vmask = jnp.asarray(vmask)

    weight_args = (wf_k, bf_col, wc, wt, ba1_col, wa2_row, ba2)

    in_specs = [
        pl.BlockSpec((1, Cin, Pp), lambda n, t, nT=nT: (n * nT + t, 0, 0)),
        pl.BlockSpec((1, 1, Pp), lambda n, t: (t, 0, 0)),
    ]
    for a in weight_args:
        in_specs.append(pl.BlockSpec(a.shape, lambda n, t, nd=a.ndim: (0,) * nd))

    out = pl.pallas_call(
        functools.partial(fim_kernel, Wp=Wp, roll_sign=_roll_sign()),
        out_shape=jax.ShapeDtypeStruct((N, nT, Pp), jnp.float32),
        grid=(N, nT),
        in_specs=in_specs,
        out_specs=pl.BlockSpec((1, 1, Pp), lambda n, t: (n, t, 0)),
        compiler_params=pltpu.CompilerParams(
            dimension_semantics=("parallel", "parallel"),
            vmem_limit_bytes=vmem_limit,
        ),
    )(xt, vmask, *weight_args)

    # Drop lane padding, tile halos, ragged rows and the W halo (cheap XLA ops
    # on the 1-channel map).
    out = out[:, :, :P].reshape(N, nT, THp, Wp)[:, :, PAD:PAD + TH, :]
    out = out.reshape(N, H_tiles, Wp)[:, :H, PAD:PAD + W]
    return out.reshape(N, 1, H, W)


def fim_reference(sr, seg, p):
    """Pure-JAX NCHW reference (explicit shuffle + lax dilated depthwise convs)."""
    x = jnp.concatenate([sr, seg], axis=1)
    f = jax.nn.relu(jnp.einsum("nchw,co->nohw", x, p["wf"])
                    + p["bf"][None, :, None, None])
    outs = []
    for bi, d in enumerate(DILATIONS):
        xb = f[:, bi * BR_CH:(bi + 1) * BR_CH]
        w = p["wb"][bi][:, None, :, :]                         # OIHW, depthwise
        y = jax.lax.conv_general_dilated(
            xb, w, window_strides=(1, 1), padding=[(d, d), (d, d)],
            rhs_dilation=(d, d),
            dimension_numbers=("NCHW", "OIHW", "NCHW"),
            feature_group_count=BR_CH)
        outs.append(y + p["bb"][bi][None, :, None, None])
    cat = jnp.concatenate(outs, axis=1)
    N, C, H, W = cat.shape
    shuf = cat.reshape(N, 3, BR_CH, H, W).transpose(0, 2, 1, 3, 4).reshape(N, C, H, W)
    a1 = jax.nn.relu(jnp.einsum("nchw,co->nohw", shuf, p["wa1"])
                     + p["ba1"][None, :, None, None])
    return jax.nn.sigmoid(jnp.einsum("nchw,co->nohw", a1, p["wa2"])
                          + p["ba2"][None, :, None, None])


if __name__ == "__main__":
    key = jax.random.PRNGKey(0)
    ks = jax.random.split(key, 12)
    N = 2
    sr_ch, seg_ch, hidden = 4, 4, 8
    assert hidden == BR_CH

    def rn(k, shape, s=0.2):
        return jax.random.normal(k, shape, dtype=jnp.float32) * s

    params = dict(
        wf=rn(ks[0], (sr_ch + seg_ch, OUT_CH)),
        bf=rn(ks[1], (OUT_CH,), 0.1),
        wb=rn(ks[2], (3, BR_CH, 3, 3)),
        bb=rn(ks[3], (3, BR_CH), 0.1),
        wa1=rn(ks[4], (OUT_CH, hidden)),
        ba1=rn(ks[5], (hidden,), 0.1),
        wa2=rn(ks[6], (hidden, 1)),
        ba2=rn(ks[7], (1,), 0.1),
    )

    # Primary check: 16x16 image, single tile per image.
    H, W = 16, 16
    sr = jax.random.normal(ks[8], (N, sr_ch, H, W), dtype=jnp.float32)
    seg = jax.random.normal(ks[9], (N, seg_ch, H, W), dtype=jnp.float32)
    out = jax.block_until_ready(fim_forward(sr, seg, params))
    ref = jax.block_until_ready(fim_reference(sr, seg, params))
    assert out.shape == (N, 1, H, W), out.shape
    err = float(jnp.max(jnp.abs(out - ref)))
    assert err < 1e-4, f"max abs mismatch vs reference: {err}"

    # Secondary check: exercise the multi-row-tile path (halo'd tiles plus a
    # ragged last tile): H=20 with 8-row tiles -> 3 tiles per image.
    H2, W2 = 20, 12
    sr2 = jax.random.normal(ks[10], (N, sr_ch, H2, W2), dtype=jnp.float32)
    seg2 = jax.random.normal(ks[11], (N, seg_ch, H2, W2), dtype=jnp.float32)
    out2 = jax.block_until_ready(fim_forward(sr2, seg2, params, tile_rows=8))
    ref2 = jax.block_until_ready(fim_reference(sr2, seg2, params))
    assert out2.shape == (N, 1, H2, W2), out2.shape
    err2 = float(jnp.max(jnp.abs(out2 - ref2)))
    assert err2 < 1e-4, f"tiled path mismatch vs reference: {err2}"

    print("KERNEL_OK")
</pallas_src>

<mosaic_0001>
module attributes {stable_mosaic.version = 11 : i64} {
  func.func @probe(%arg0: memref<8x128xf32, #tpu.memory_space<vmem>>, %arg1: memref<8x128xf32, #tpu.memory_space<vmem>>) attributes {dimension_semantics = [], scalar_prefetch = 0 : i64, scratch_operands = 0 : i64, tpu.core_type = #tpu.core_type<tc>} {
    %c0 = arith.constant 0 : index
    %c0_0 = arith.constant 0 : index
    %0 = vector.load %arg0[%c0, %c0_0] : memref<8x128xf32, #tpu.memory_space<vmem>>, vector<8x128xf32>
    %c1_i32 = arith.constant 1 : i32
    %1 = tpu.dynamic_rotate %0 by %c1_i32 dim 1 : vector<8x128xf32>, i32 -> vector<8x128xf32>
    %c0_1 = arith.constant 0 : index
    %c0_2 = arith.constant 0 : index
    %2 = vector.load %arg1[%c0_1, %c0_2] : memref<8x128xf32, #tpu.memory_space<vmem>>, vector<8x128xf32>
    tpu.vector_store %arg1[%c0_1, %c0_2], %1 {strides = array<i32>} : memref<8x128xf32, #tpu.memory_space<vmem>>, vector<8x128xf32>,
    return
  }
}

</mosaic_0001>

<bundles_post_ra>
// kernel: tpu_custom_call.1
= control target key start
LH: loop header
LB: loop body
LE: loop exit
PB: predicated region body
PF: predicated region fallthrough
CT: control target
= control target key end

     0   :  { %6 = vsyncpa [#allocation3], 0  ;;  %s128_s0 = inlined_call_operand.hbm [shape: f32[8,128], index: 0, kind: input, shape index: {}]   ;;  %s129_s1 = inlined_call_operand.hbm [shape: f32[8,128], index: 1, kind: output, shape index: {}]  }
   0x1   :  { %7 = vsyncpa [#allocation4], 0  ;;  %s91_s6 = smov [#allocation2]   ;;  %s43_s10 = scalar_lea.hbm %s128_s0, 128 }
   0x2   :  { %s14_s7 = sshll.u32 %s91_s6, 4  ;;  %p44_p0 = scmp.ne.s32.totalorder %s128_s0, %s43_s10  ;;  %s15_s7 = int_to_ptr.vmem [resolvable:$true] %s14_s7 }
   0x3   :  { %p47_p1 = scmp.lt.u32.totalorder %s43_s10, %s128_s0 }
   0x5   :  { %p49_p2 = pnand %p47_p1, %p44_p0 }
   0x7   :  { %52 = shalt.err (!%p49_p2)
}
   0x8   :  { %s53_s15 = scalar_lea.vmem %s15_s7, 128  ;;  %p58_p4 = scmp.lt.s32.totalorder %s15_s7, %s15_s7 }
   0x9   :  { %p54_p3 = scmp.ne.s32.totalorder %s15_s7, %s53_s15  ;;  %p59_p5 = scmp.lt.s32.totalorder %s53_s15, %s53_s15 }
   0xb   :  { %p60_p6 = por %p59_p5, %p58_p4 }
   0xd   :  { %p61_p7 = pnand %p60_p6, %p54_p3 }
   0xf   :  { %64 = shalt.err (!%p61_p7)
}
  0x10   :  { %17 = dma.hbm_to_vmem [thread:$0]  %s128_s0, 128, %s15_s7, [#allocation3]  }
  0x11   :  { %87 = dma.done.wait [#allocation3], 128  }
  0x12   :  { %88 = vsyncadd [#allocation3], 4294967168  ;;  %v21_v0 = vld [vmem:[#allocation2] sm:$0xff]  ;;  %s92_s18 = smov 1   ;;  %s93_s19 = smov [#allocation5]  }
  0x13   :  { %22 = vrot.lane.b32.xlu0 %v21_v0, %s92_s18  ;;  %s31_s20 = sshll.u32 %s93_s19, 4  ;;  %s32_s20 = int_to_ptr.vmem [resolvable:$true] %s31_s20 }
  0x14   :  { %s65_s21 = scalar_lea.vmem %s32_s20, 128  ;;  %p70_p9 = scmp.lt.s32.totalorder %s32_s20, %s32_s20 }
  0x15   :  { %p66_p8 = scmp.ne.s32.totalorder %s32_s20, %s65_s21  ;;  %p71_p10 = scmp.lt.s32.totalorder %s65_s21, %s65_s21 }
  0x17   :  { %p72_p11 = por %p71_p10, %p70_p9 }
  0x19   :  { %p73_p12 = pnand %p72_p11, %p66_p8 }
  0x85   :  { %v23_v1 = vpop.permute.xlu0 %22 }
  0x86   :  { %24 = vst [vmem:[#allocation5] sm:$0xff] %v23_v1 }
  0x87   :  { %76 = shalt.err (!%p73_p12)
}
  0x88   :  { %s77_s0 = scalar_lea.hbm %s129_s1, 128 }
  0x89   :  { %p78_p13 = scmp.ne.s32.totalorder %s129_s1, %s77_s0  ;;  %p81_p0 = scmp.lt.u32.totalorder %s77_s0, %s129_s1 }
  0x8b   :  { %p83_p1 = pnand %p81_p0, %p78_p13 }
  0x8d   :  { %86 = shalt.err (!%p83_p1)
}
  0x8e   :  { %34 = dma.vmem_to_hbm [thread:$0]  %s32_s20, 128, %s129_s1, [#allocation4]  }
  0x8f   :  { %89 = dma.done.wait [#allocation4], 128  }
  0x90   :  { %90 = vsyncadd [#allocation4], 4294967168 }
  0x91   :  { %38 = vsyncpa [#allocation3], 1 }
  0x92   :  { %39 = vsyncpa [#allocation4], 1 }

</bundles_post_ra>
